<compile_context>
chip_gen: v5e
topology: v5e:2x2
jax: 0.10.0
libtpu: 0.0.40
codegen_flags: <defaults>
</compile_context>

<pallas_src>
import functools

import jax
import jax.numpy as jnp
from jax import lax
from jax.experimental import pallas as pl
from jax.experimental.pallas import tpu as pltpu


_TARGET_BLOCK_BYTES = 4 * 1024 * 1024      # per-input, per-buffer mel row block
_SMALL_RESIDENT_BUDGET = 4 * 1024 * 1024   # padded-VMEM budget for ride-along tensors
_VMEM_LIMIT = 32 * 1024 * 1024             # safe on v5e / v6e / v7x


def _round_up(x, m):
    return (x + m - 1) // m * m


def _as_2d(x):
    """Free (for contiguous inputs) 2D view: (prod(leading dims), last dim)."""
    if x.ndim == 0:
        return x.reshape(1, 1)
    if x.ndim == 1:
        return x.reshape(1, x.shape[0])
    return x.reshape(-1, x.shape[-1])


def _padded_vmem_bytes(x):
    """Approx. VMEM footprint of a resident 32-bit tensor after (8,128) tiling."""
    s = list(x.shape) or [1]
    if len(s) == 1:
        s = [1, s[0]]
    lead = 1
    for d in s[:-2]:
        lead *= d
    return lead * _round_up(s[-2], 8) * _round_up(s[-1], 128) * 4


def _plan_row_tiles(R, C, itemsize):
    """Pick (tile_rows, num_blocks, mask_tail) for the (R, C) row-block grid."""
    if R <= 8:
        return R, 1, False                      # single full-extent block
    rows_per_block = max(8, (_TARGET_BLOCK_BYTES // max(1, C * itemsize)) // 8 * 8)
    tile_rows = min(_round_up(R, 8), rows_per_block)
    if tile_rows >= R:
        return R, 1, False                      # single full-extent block
    num_blocks = -(-R // tile_rows)
    # Nudge toward an even block count so v7x's two TensorCores split evenly.
    if num_blocks > 1 and num_blocks % 2 == 1:
        alt_rows = max(8, _round_up(-(-R // (num_blocks + 1)), 8))
        alt_blocks = -(-R // alt_rows)
        if alt_blocks % 2 == 0:
            tile_rows, num_blocks = alt_rows, alt_blocks
    return tile_rows, num_blocks, (R % tile_rows) != 0


# --------------------------- in-kernel helpers ---------------------------

def _masked_diff(p_ref, t_ref, tile_rows, total_rows, mask_tail):
    """f32 diff of the current row block, zeroing rows past the true extent."""
    d = p_ref[...].astype(jnp.float32) - t_ref[...].astype(jnp.float32)
    if mask_tail:
        row = (lax.broadcasted_iota(jnp.int32, d.shape, 0)
               + pl.program_id(0) * tile_rows)
        d = jnp.where(row < total_rows, d, 0.0)
    return d


# --------------------------- fused single-launch kernel ---------------------------

def _fused_loss_kernel(mel_p_ref, mel_t_ref,
                       dur_ref, durt_ref, pit_ref, pitt_ref, en_ref, ent_ref,
                       out_ref, *, tile_rows, total_rows, mask_tail):
    i = pl.program_id(0)

    # Mel MSE partial for this row block (HBM-bandwidth bound).
    d = _masked_diff(mel_p_ref, mel_t_ref, tile_rows, total_rows, mask_tail)
    out_ref[0, 0] = jnp.sum(d * d)

    # Tiny losses: computed once, by whichever core owns grid step 0.
    @pl.when(i == 0)
    def _():
        dd = dur_ref[...].astype(jnp.float32) - durt_ref[...].astype(jnp.float32)
        pd = pit_ref[...].astype(jnp.float32) - pitt_ref[...].astype(jnp.float32)
        ed = en_ref[...].astype(jnp.float32) - ent_ref[...].astype(jnp.float32)
        out_ref[0, 1] = jnp.sum(jnp.abs(dd))
        out_ref[0, 2] = jnp.sum(pd * pd)
        out_ref[0, 3] = jnp.sum(ed * ed)

    @pl.when(i != 0)
    def _():
        out_ref[0, 1] = jnp.float32(0.0)
        out_ref[0, 2] = jnp.float32(0.0)
        out_ref[0, 3] = jnp.float32(0.0)


def _fused_losses(mel, mel_target, duration, duration_target,
                  pitch, pitch_target, energy, energy_target):
    mel2, melt2 = _as_2d(mel), _as_2d(mel_target)
    R, C = mel2.shape
    tile_rows, num_blocks, mask_tail = _plan_row_tiles(R, C, mel2.dtype.itemsize)

    kernel = functools.partial(_fused_loss_kernel, tile_rows=tile_rows,
                               total_rows=R, mask_tail=mask_tail)

    small = tuple(_as_2d(x) for x in (duration, duration_target,
                                      pitch, pitch_target,
                                      energy, energy_target))
    resident_specs = [pl.BlockSpec(x.shape, lambda i: (0, 0)) for x in small]

    partials = pl.pallas_call(
        kernel,
        out_shape=jax.ShapeDtypeStruct((num_blocks, 4), jnp.float32),
        grid=(num_blocks,),
        in_specs=[pl.BlockSpec((tile_rows, C), lambda i: (i, 0)),
                  pl.BlockSpec((tile_rows, C), lambda i: (i, 0))]
                 + resident_specs,
        out_specs=pl.BlockSpec((1, 4), lambda i: (i, 0),
                               memory_space=pltpu.SMEM),
        compiler_params=pltpu.CompilerParams(
            dimension_semantics=("parallel",),
            vmem_limit_bytes=_VMEM_LIMIT),
    )(mel2, melt2, *small)

    mel_loss = jnp.sum(partials[:, 0]) / jnp.float32(mel.size)
    duration_loss = partials[0, 1] / jnp.float32(duration.size)
    pitch_loss = partials[0, 2] / jnp.float32(pitch.size)
    energy_loss = partials[0, 3] / jnp.float32(energy.size)
    return mel_loss, duration_loss, pitch_loss, energy_loss


# --------------------------- fallback tiled reduction ---------------------------

def _partial_reduce_kernel(p_ref, t_ref, out_ref, *, tile_rows, total_rows,
                           mask_tail, op):
    d = _masked_diff(p_ref, t_ref, tile_rows, total_rows, mask_tail)
    out_ref[0, 0] = jnp.sum(jnp.abs(d)) if op == "abs" else jnp.sum(d * d)


def _tiled_mean(pred, target, op):
    """mean(|d|) or mean(d^2) via a tiled two-stage reduction (no padded copies)."""
    n = pred.size
    p2, t2 = _as_2d(pred), _as_2d(target)
    R, C = p2.shape
    tile_rows, num_blocks, mask_tail = _plan_row_tiles(R, C, p2.dtype.itemsize)
    kernel = functools.partial(_partial_reduce_kernel, tile_rows=tile_rows,
                               total_rows=R, mask_tail=mask_tail, op=op)
    partials = pl.pallas_call(
        kernel,
        out_shape=jax.ShapeDtypeStruct((num_blocks, 1), jnp.float32),
        grid=(num_blocks,),
        in_specs=[pl.BlockSpec((tile_rows, C), lambda i: (i, 0)),
                  pl.BlockSpec((tile_rows, C), lambda i: (i, 0))],
        out_specs=pl.BlockSpec((1, 1), lambda i: (i, 0),
                               memory_space=pltpu.SMEM),
        compiler_params=pltpu.CompilerParams(
            dimension_semantics=("parallel",),
            vmem_limit_bytes=_VMEM_LIMIT),
    )(p2, t2)
    return jnp.sum(partials) / jnp.float32(n)


# --------------------------- public entry point ---------------------------

def fastspeech_loss(mel, duration, pitch, energy,
                    mel_target, duration_target, energy_target, pitch_target):
    """Mirrors FastSpeechLoss.forward:
       returns (mel_loss, duration_loss, energy_loss, pitch_loss)."""
    small = (duration, duration_target, pitch, pitch_target, energy, energy_target)
    small_padded_bytes = sum(_padded_vmem_bytes(x) for x in small)

    if small_padded_bytes <= _SMALL_RESIDENT_BUDGET:
        # One launch: mel partials + tiny losses riding along as residents.
        mel_loss, duration_loss, pitch_loss, energy_loss = _fused_losses(
            mel, mel_target, duration, duration_target,
            pitch, pitch_target, energy, energy_target)
    else:
        # Rare: small tensors too big to sit resident -> tile each loss.
        mel_loss = _tiled_mean(mel, mel_target, "sq")
        duration_loss = _tiled_mean(duration, duration_target, "abs")
        pitch_loss = _tiled_mean(pitch, pitch_target, "sq")
        energy_loss = _tiled_mean(energy, energy_target, "sq")

    # Original module's return order: (mel, duration, energy, pitch).
    return mel_loss, duration_loss, energy_loss, pitch_loss


if __name__ == "__main__":
    key = jax.random.PRNGKey(0)
    B, T, N_MELS = 2, 16, 32
    ks = jax.random.split(key, 8)

    mel = jax.random.normal(ks[0], (B, T, N_MELS), jnp.float32)
    mel_target = jax.random.normal(ks[1], (B, T, N_MELS), jnp.float32)
    duration = jax.random.normal(ks[2], (B, T), jnp.float32)
    duration_target = jax.random.randint(ks[3], (B, T), 0, 10, jnp.int32)
    pitch = jax.random.normal(ks[4], (B, T), jnp.float32)
    pitch_target = jax.random.normal(ks[5], (B, T), jnp.float32)
    energy = jax.random.normal(ks[6], (B, T), jnp.float32)
    energy_target = jax.random.normal(ks[7], (B, T), jnp.float32)

    out = jax.jit(fastspeech_loss)(
        mel, duration, pitch, energy,
        mel_target, duration_target, energy_target, pitch_target)
    out = jax.block_until_ready(out)

    # Reference check (plain JAX) to confirm exact semantics.
    ref = (
        jnp.mean((mel - mel_target) ** 2),
        jnp.mean(jnp.abs(duration - duration_target.astype(jnp.float32))),
        jnp.mean((energy - energy_target) ** 2),
        jnp.mean((pitch - pitch_target) ** 2),
    )
    for got, want in zip(out, ref):
        assert jnp.allclose(got, want, rtol=1e-6, atol=1e-6), (got, want)

    print("KERNEL_OK")
</pallas_src>

<mosaic_0001>
module attributes {stable_mosaic.version = 11 : i64} {
  func.func @_fused_loss_kernel(%arg0: i32, %arg1: memref<32x32xf32, #tpu.memory_space<vmem>>, %arg2: memref<32x32xf32, #tpu.memory_space<vmem>>, %arg3: memref<2x16xf32, #tpu.memory_space<vmem>>, %arg4: memref<2x16xi32, #tpu.memory_space<vmem>>, %arg5: memref<2x16xf32, #tpu.memory_space<vmem>>, %arg6: memref<2x16xf32, #tpu.memory_space<vmem>>, %arg7: memref<2x16xf32, #tpu.memory_space<vmem>>, %arg8: memref<2x16xf32, #tpu.memory_space<vmem>>, %arg9: memref<1x4xf32, #tpu.memory_space<smem>>) attributes {dimension_semantics = [#tpu.dimension_semantics<parallel>], iteration_bounds = array<i64: 1>, scalar_prefetch = 0 : i64, scratch_operands = 0 : i64, tpu.core_type = #tpu.core_type<tc>, window_params = [{transform_indices = @transform_0, window_bounds = array<i64: 32, 32>}, {transform_indices = @transform_1, window_bounds = array<i64: 32, 32>}, {pipeline_mode = #tpu.pipeline_mode<synchronous>, transform_indices = @transform_2, window_bounds = array<i64: 2, 16>}, {pipeline_mode = #tpu.pipeline_mode<synchronous>, transform_indices = @transform_3, window_bounds = array<i64: 2, 16>}, {pipeline_mode = #tpu.pipeline_mode<synchronous>, transform_indices = @transform_4, window_bounds = array<i64: 2, 16>}, {pipeline_mode = #tpu.pipeline_mode<synchronous>, transform_indices = @transform_5, window_bounds = array<i64: 2, 16>}, {pipeline_mode = #tpu.pipeline_mode<synchronous>, transform_indices = @transform_6, window_bounds = array<i64: 2, 16>}, {pipeline_mode = #tpu.pipeline_mode<synchronous>, transform_indices = @transform_7, window_bounds = array<i64: 2, 16>}, {transform_indices = @transform_8, window_bounds = array<i64: 1, 4>}]} {
    %c0 = arith.constant 0 : index
    %c0_0 = arith.constant 0 : index
    %0 = vector.load %arg1[%c0, %c0_0] : memref<32x32xf32, #tpu.memory_space<vmem>>, vector<32x32xf32>
    %c0_1 = arith.constant 0 : index
    %c0_2 = arith.constant 0 : index
    %1 = vector.load %arg2[%c0_1, %c0_2] : memref<32x32xf32, #tpu.memory_space<vmem>>, vector<32x32xf32>
    %2 = arith.subf %0, %1 : vector<32x32xf32>
    %3 = arith.mulf %2, %2 : vector<32x32xf32>
    %4 = vector.shape_cast %3 : vector<32x32xf32> to vector<1x32x32xf32>
    %cst = arith.constant dense<0.000000e+00> : vector<1xf32>
    %5 = vector.multi_reduction <add>, %4, %cst [1, 2] : vector<1x32x32xf32> to vector<1xf32>
    %6 = vector.shape_cast %5 : vector<1xf32> to vector<1x1x1xf32>
    %7 = vector.extract %6[0, 0, 0] : f32 from vector<1x1x1xf32>
    %c0_3 = arith.constant 0 : index
    %c0_4 = arith.constant 0 : index
    %8 = memref.load %arg9[%c0_3, %c0_4] : memref<1x4xf32, #tpu.memory_space<smem>>
    memref.store %7, %arg9[%c0_3, %c0_4] : memref<1x4xf32, #tpu.memory_space<smem>>
    %c0_i32 = arith.constant 0 : i32
    %9 = arith.cmpi eq, %arg0, %c0_i32 : i32
    %10 = arith.extui %9 : i1 to i32
    %c0_i32_5 = arith.constant 0 : i32
    %11 = arith.cmpi ne, %10, %c0_i32_5 : i32
    scf.if %11 {
      %c0_8 = arith.constant 0 : index
      %c0_9 = arith.constant 0 : index
      %15 = vector.load %arg3[%c0_8, %c0_9] : memref<2x16xf32, #tpu.memory_space<vmem>>, vector<2x16xf32>
      %c0_10 = arith.constant 0 : index
      %c0_11 = arith.constant 0 : index
      %16 = vector.load %arg4[%c0_10, %c0_11] : memref<2x16xi32, #tpu.memory_space<vmem>>, vector<2x16xi32>
      %17 = arith.sitofp %16 : vector<2x16xi32> to vector<2x16xf32>
      %18 = arith.subf %15, %17 : vector<2x16xf32>
      %c0_12 = arith.constant 0 : index
      %c0_13 = arith.constant 0 : index
      %19 = vector.load %arg5[%c0_12, %c0_13] : memref<2x16xf32, #tpu.memory_space<vmem>>, vector<2x16xf32>
      %c0_14 = arith.constant 0 : index
      %c0_15 = arith.constant 0 : index
      %20 = vector.load %arg6[%c0_14, %c0_15] : memref<2x16xf32, #tpu.memory_space<vmem>>, vector<2x16xf32>
      %21 = arith.subf %19, %20 : vector<2x16xf32>
      %c0_16 = arith.constant 0 : index
      %c0_17 = arith.constant 0 : index
      %22 = vector.load %arg7[%c0_16, %c0_17] : memref<2x16xf32, #tpu.memory_space<vmem>>, vector<2x16xf32>
      %c0_18 = arith.constant 0 : index
      %c0_19 = arith.constant 0 : index
      %23 = vector.load %arg8[%c0_18, %c0_19] : memref<2x16xf32, #tpu.memory_space<vmem>>, vector<2x16xf32>
      %24 = arith.subf %22, %23 : vector<2x16xf32>
      %25 = math.absf %18 : vector<2x16xf32>
      %26 = vector.shape_cast %25 : vector<2x16xf32> to vector<1x2x16xf32>
      %cst_20 = arith.constant dense<0.000000e+00> : vector<1xf32>
      %27 = vector.multi_reduction <add>, %26, %cst_20 [1, 2] : vector<1x2x16xf32> to vector<1xf32>
      %28 = vector.shape_cast %27 : vector<1xf32> to vector<1x1x1xf32>
      %29 = vector.extract %28[0, 0, 0] : f32 from vector<1x1x1xf32>
      %c0_21 = arith.constant 0 : index
      %c1 = arith.constant 1 : index
      %30 = memref.load %arg9[%c0_21, %c1] : memref<1x4xf32, #tpu.memory_space<smem>>
      memref.store %29, %arg9[%c0_21, %c1] : memref<1x4xf32, #tpu.memory_space<smem>>
      %31 = arith.mulf %21, %21 : vector<2x16xf32>
      %32 = vector.shape_cast %31 : vector<2x16xf32> to vector<1x2x16xf32>
      %cst_22 = arith.constant dense<0.000000e+00> : vector<1xf32>
      %33 = vector.multi_reduction <add>, %32, %cst_22 [1, 2] : vector<1x2x16xf32> to vector<1xf32>
      %34 = vector.shape_cast %33 : vector<1xf32> to vector<1x1x1xf32>
      %35 = vector.extract %34[0, 0, 0] : f32 from vector<1x1x1xf32>
      %c0_23 = arith.constant 0 : index
      %c2 = arith.constant 2 : index
      %36 = memref.load %arg9[%c0_23, %c2] : memref<1x4xf32, #tpu.memory_space<smem>>
      memref.store %35, %arg9[%c0_23, %c2] : memref<1x4xf32, #tpu.memory_space<smem>>
      %37 = arith.mulf %24, %24 : vector<2x16xf32>
      %38 = vector.shape_cast %37 : vector<2x16xf32> to vector<1x2x16xf32>
      %cst_24 = arith.constant dense<0.000000e+00> : vector<1xf32>
      %39 = vector.multi_reduction <add>, %38, %cst_24 [1, 2] : vector<1x2x16xf32> to vector<1xf32>
      %40 = vector.shape_cast %39 : vector<1xf32> to vector<1x1x1xf32>
      %41 = vector.extract %40[0, 0, 0] : f32 from vector<1x1x1xf32>
      %c0_25 = arith.constant 0 : index
      %c3 = arith.constant 3 : index
      %42 = memref.load %arg9[%c0_25, %c3] : memref<1x4xf32, #tpu.memory_space<smem>>
      memref.store %41, %arg9[%c0_25, %c3] : memref<1x4xf32, #tpu.memory_space<smem>>
    } else {
    }
    %c0_i32_6 = arith.constant 0 : i32
    %12 = arith.cmpi ne, %arg0, %c0_i32_6 : i32
    %13 = arith.extui %12 : i1 to i32
    %c0_i32_7 = arith.constant 0 : i32
    %14 = arith.cmpi ne, %13, %c0_i32_7 : i32
    scf.if %14 {
      %cst_8 = arith.constant 0.000000e+00 : f32
      %c0_9 = arith.constant 0 : index
      %c1 = arith.constant 1 : index
      %15 = memref.load %arg9[%c0_9, %c1] : memref<1x4xf32, #tpu.memory_space<smem>>
      memref.store %cst_8, %arg9[%c0_9, %c1] : memref<1x4xf32, #tpu.memory_space<smem>>
      %cst_10 = arith.constant 0.000000e+00 : f32
      %c0_11 = arith.constant 0 : index
      %c2 = arith.constant 2 : index
      %16 = memref.load %arg9[%c0_11, %c2] : memref<1x4xf32, #tpu.memory_space<smem>>
      memref.store %cst_10, %arg9[%c0_11, %c2] : memref<1x4xf32, #tpu.memory_space<smem>>
      %cst_12 = arith.constant 0.000000e+00 : f32
      %c0_13 = arith.constant 0 : index
      %c3 = arith.constant 3 : index
      %17 = memref.load %arg9[%c0_13, %c3] : memref<1x4xf32, #tpu.memory_space<smem>>
      memref.store %cst_12, %arg9[%c0_13, %c3] : memref<1x4xf32, #tpu.memory_space<smem>>
    } else {
    }
    return
  }
  func.func @transform_0(%arg0: i32) -> (i32, i32) {
    %c0_i32 = arith.constant 0 : i32
    %c0_i32_0 = arith.constant 0 : i32
    return %arg0, %c0_i32 : i32, i32
  }
  func.func @transform_1(%arg0: i32) -> (i32, i32) {
    %c0_i32 = arith.constant 0 : i32
    %c0_i32_0 = arith.constant 0 : i32
    return %arg0, %c0_i32 : i32, i32
  }
  func.func @transform_2(%arg0: i32) -> (i32, i32) {
    %c0_i32 = arith.constant 0 : i32
    %c0_i32_0 = arith.constant 0 : i32
    %c0_i32_1 = arith.constant 0 : i32
    return %c0_i32, %c0_i32_0 : i32, i32
  }
  func.func @transform_3(%arg0: i32) -> (i32, i32) {
    %c0_i32 = arith.constant 0 : i32
    %c0_i32_0 = arith.constant 0 : i32
    %c0_i32_1 = arith.constant 0 : i32
    return %c0_i32, %c0_i32_0 : i32, i32
  }
  func.func @transform_4(%arg0: i32) -> (i32, i32) {
    %c0_i32 = arith.constant 0 : i32
    %c0_i32_0 = arith.constant 0 : i32
    %c0_i32_1 = arith.constant 0 : i32
    return %c0_i32, %c0_i32_0 : i32, i32
  }
  func.func @transform_5(%arg0: i32) -> (i32, i32) {
    %c0_i32 = arith.constant 0 : i32
    %c0_i32_0 = arith.constant 0 : i32
    %c0_i32_1 = arith.constant 0 : i32
    return %c0_i32, %c0_i32_0 : i32, i32
  }
  func.func @transform_6(%arg0: i32) -> (i32, i32) {
    %c0_i32 = arith.constant 0 : i32
    %c0_i32_0 = arith.constant 0 : i32
    %c0_i32_1 = arith.constant 0 : i32
    return %c0_i32, %c0_i32_0 : i32, i32
  }
  func.func @transform_7(%arg0: i32) -> (i32, i32) {
    %c0_i32 = arith.constant 0 : i32
    %c0_i32_0 = arith.constant 0 : i32
    %c0_i32_1 = arith.constant 0 : i32
    return %c0_i32, %c0_i32_0 : i32, i32
  }
  func.func @transform_8(%arg0: i32) -> (i32, i32) {
    %c0_i32 = arith.constant 0 : i32
    %c0_i32_0 = arith.constant 0 : i32
    return %arg0, %c0_i32 : i32, i32
  }
}

</mosaic_0001>

<bundles_post_ra>
// kernel: fastspeech_loss.1
= control target key start
LH: loop header
LB: loop body
LE: loop exit
PB: predicated region body
PF: predicated region fallthrough
CT: control target
= control target key end

     0   :  { %13 = vsyncpa [#allocation3], 0  ;;  %s462_s0 = inlined_call_operand.hbm [shape: f32[32,32], index: 0, kind: input, shape index: {}]   ;;  %s463_s1 = inlined_call_operand.hbm [shape: f32[32,32], index: 1, kind: input, shape index: {}]   ;;  %s464_s2 = inlined_call_operand.vmem [shape: f32[2,16], index: 2, kind: input, shape index: {}]   ;;  %s465_s3 = inlined_call_operand.vmem [shape: s32[2,16], index: 3, kind: input, shape index: {}]   ;;  %s466_s4 = inlined_call_operand.hbm [shape: f32[2,16], index: 4, kind: input, shape index: {}]   ;;  %s467_s5 = inlined_call_operand.vmem [shape: f32[2,16], index: 5, kind: input, shape index: {}]   ;;  %s468_s6 = inlined_call_operand.hbm [shape: f32[2,16], index: 6, kind: input, shape index: {}]   ;;  %s469_s7 = inlined_call_operand.hbm [shape: f32[2,16], index: 7, kind: input, shape index: {}]   ;;  %s470_s8 = inlined_call_operand.vmem [shape: f32[1,4], index: 8, kind: output, shape index: {}]  }
   0x1   :  { %14 = vsyncpa [#allocation6], 0 }
   0x2   :  { %15 = vsyncpa [#allocation9], 0 }
   0x3   :  { %16 = vsyncpa [#allocation4], 0  ;;  %s34_s29 = sshll.u32 %s463_s1, 4  ;;  %s375_s30 = smov [#allocation5]   ;;  %s35_s29 = int_to_ptr.hbm [resolvable:$true] %s34_s29 }
   0x4   :  { %s36_s9 = sshll.u32 %s375_s30, 4  ;;  %s65_s12 = sshll.u32 %s468_s6, 4  ;;  %s37_s9 = int_to_ptr.vmem [resolvable:$true] %s36_s9  ;;  %s66_s12 = int_to_ptr.hbm [resolvable:$true] %s65_s12 }
   0x5   :  { %s376_s13 = smov 128   ;;  %s377_s14 = smov 8  }
   0x6   :  { %42 = dma.hbm_to_vmem [thread:$0]  %s35_s29, 512, %s37_s9, [#allocation6], %s376_s13, %s376_s13, %s377_s14  }
   0x7   :  { %s378_s15 = smov [#allocation8]   ;;  %s21_s19 = sshll.u32 %s462_s0, 4  ;;  %s22_s19 = int_to_ptr.hbm [resolvable:$true] %s21_s19 }
   0x8   :  { %s67_s16 = sshll.u32 %s378_s15, 4  ;;  %s52_s21 = sshll.u32 %s466_s4, 4  ;;  %s68_s16 = int_to_ptr.vmem [resolvable:$true] %s67_s16  ;;  %s53_s21 = int_to_ptr.hbm [resolvable:$true] %s52_s21 }
   0x9   :  { %70 = dma.hbm_to_vmem [thread:$0]  %s66_s12, 32, %s68_s16, [#allocation9]  }
   0xa   :  { %s379_s22 = smov [#allocation2]   ;;  %s380_s6 = smov [#allocation7]  }
   0xb   :  { %s23_s23 = sshll.u32 %s379_s22, 4  ;;  %s54_s24 = sshll.u32 %s380_s6, 4  ;;  %s24_s23 = int_to_ptr.vmem [resolvable:$true] %s23_s23  ;;  %s55_s24 = int_to_ptr.vmem [resolvable:$true] %s54_s24 }
   0xc   :  { %29 = dma.hbm_to_vmem [thread:$0]  %s22_s19, 512, %s24_s23, [#allocation3], %s376_s13, %s376_s13, %s377_s14  }
   0xd   :  { %s76_s27 = sshll.u32 %s469_s7, 4  ;;  %s381_s0 = smov [#allocation10]   ;;  %s77_s27 = int_to_ptr.hbm [resolvable:$true] %s76_s27 }
   0xe   :  { %57 = dma.hbm_to_vmem [thread:$0]  %s53_s21, 32, %s55_s24, [#allocation6]  }
   0xf   :  { %s78_s28 = sshll.u32 %s381_s0, 4  ;;  %s79_s28 = int_to_ptr.vmem [resolvable:$true] %s78_s28 }
  0x10   :  { %81 = dma.hbm_to_vmem [thread:$0]  %s77_s27, 32, %s79_s28, [#allocation9]  }
  0x11   :  { %367 = dma.done.wait [#allocation3], 512  }
  0x12   :  { %368 = vsyncadd [#allocation3], 4294966784 }
  0x13   :  { %369 = dma.done.wait [#allocation6], 544  }
  0x14   :  { %370 = vsyncadd [#allocation6], 4294966752 }
  0x15   :  { %371 = dma.done.wait [#allocation9], 64  }
  0x16   :  { %372 = vsyncadd [#allocation9], 4294967232  ;;  %v145_v0 = vld [vmem:[#allocation7] sm:$0x3]  ;;  %v103_v4 = vld [vmem:[#allocation2 + $0x8] sm:$0xff]  ;;  %vm152_vm0 = vcmask 123904  }
  0x17   :  { %v146_v1 = vld [vmem:[%s467_s5] sm:$0x3]  ;;  %v104_v5 = vld [vmem:[#allocation2 + $0x10] sm:$0xff]  ;;  %v105_v6 = vld [vmem:[#allocation2 + $0x18] sm:$0xff]  ;;  %vm118_vm1 = vcmask 261120   ;;  %s206_s11 = sshll.u32 %s470_s8, 4  ;;  %s207_s11 = int_to_ptr.vmem [resolvable:$true] %s206_s11 }
  0x18   :  { %v102_v2 = vld [vmem:[#allocation2] sm:$0xff]  ;;  %v147_v3 = vsub.f32 %v145_v0, %v146_v1  ;;  %v107_v8 = vld [vmem:[#allocation5 + $0x8] sm:$0xff]  ;;  %v108_v9 = vld [vmem:[#allocation5 + $0x10] sm:$0xff]  ;;  %s382_s15 = smov [#allocation11]  }
  0x19   :  { %v106_v7 = vld [vmem:[#allocation5] sm:$0xff]  ;;  %v109_v11 = vld [vmem:[#allocation5 + $0x18] sm:$0xff]  ;;  %v111_v13 = vsub.f32 %v103_v4, %v107_v8  ;;  %v112_v14 = vsub.f32 %v104_v5, %v108_v9 }
  0x1a   :  { %v165_v10 = vmul.f32 %v147_v3, %v147_v3  ;;  %v110_v12 = vsub.f32 %v102_v2, %v106_v7  ;;  %v148_v15 = vld [vmem:[#allocation8] sm:$0x3]  ;;  %v149_v16 = vld [vmem:[#allocation10] sm:$0x3]  ;;  %v113_v17 = vsub.f32 %v105_v6, %v109_v11  ;;  %v142_v19 = vld [vmem:[%s465_s3] sm:$0x3] }
  0x1b   :  { %v150_v18 = vsub.f32 %v148_v15, %v149_v16  ;;  %v115_v22 = vmul.f32 %v111_v13, %v111_v13  ;;  %v116_v23 = vmul.f32 %v112_v14, %v112_v14  ;;  %v143_v29 = vcvt.s32.f32 %v142_v19  ;;  %v141_v31 = vld [vmem:[%s464_s2] sm:$0x3] }
  0x1c   :  { %v166_v20 = vsel %vm152_vm0, %v165_v10, 0.0  ;;  %v114_v21 = vmul.f32 %v110_v12, %v110_v12  ;;  %v117_v24 = vmul.f32 %v113_v17, %v113_v17 }
  0x1d   :  { %167 = vadd.xlane.f32.xlu1 %v166_v20  ;;  %v178_v25 = vmul.f32 %v150_v18, %v150_v18  ;;  %v120_v27 = vsel %vm118_vm1, %v115_v22, 0.0  ;;  %v122_v28 = vsel %vm118_vm1, %v116_v23, 0.0  ;;  %v144_v35 = vsub.f32 %v141_v31, %v143_v29 }
  0x1e   :  { %v119_v26 = vsel %vm118_vm1, %v114_v21, 0.0  ;;  %v124_v32 = vsel %vm118_vm1, %v117_v24, 0.0 }
  0x1f   :  { %v121_v30 = vadd.f32 %v120_v27, %v119_v26  ;;  %v179_v34 = vsel %vm152_vm0, %v178_v25, 0.0  ;;  %v151_v37 = vand.u32 2147483647, %v144_v35 }
  0x21   :  { %v123_v33 = vadd.f32 %v122_v28, %v121_v30  ;;  %v153_v38 = vsel %vm152_vm0, %v151_v37, 0.0 }
  0x23   :  { %v125_v36 = vadd.f32 %v124_v32, %v123_v33 }
  0x25   :  { %126 = vadd.xlane.f32.xlu0 %v125_v36  ;;  %180 = vadd.xlane.f32.xlu1 %v179_v34 }
  0x2d   :  { %154 = vadd.xlane.f32.xlu0 %v153_v38 }
  0x90   :  { %v168_v39 = vpop.xlane.xlu1 %167 }
  0x91   :  { %v169_v40 = vrot.slane %v168_v39, 4 }
  0x93   :  { %v170_v46 = vadd.f32 %v169_v40, %v168_v39 }
  0x95   :  { %v171_v50 = vrot.slane %v170_v46, 2 }
  0x97   :  { %v172_v57 = vadd.f32 %v171_v50, %v170_v46 }
  0x98   :  { %v127_v41 = vpop.xlane.xlu0 %126  ;;  %v181_v42 = vpop.xlane.xlu1 %180 }
  0x99   :  { %v128_v43 = vrot.slane %v127_v41, 4  ;;  %v182_v44 = vrot.slane %v181_v42, 4  ;;  %v173_v61 = vrot.slane %v172_v57, 1 }
  0x9b   :  { %v129_v45 = vadd.f32 %v128_v43, %v127_v41  ;;  %v183_v48 = vadd.f32 %v182_v44, %v181_v42  ;;  %v174_v1 = vadd.f32 %v173_v61, %v172_v57 }
  0x9d   :  { %v130_v47 = vrot.slane %v129_v45, 2  ;;  %v184_v52 = vrot.slane %v183_v48, 2 }
  0x9f   :  { %v131_v49 = vadd.f32 %v130_v47, %v129_v45  ;;  %v185_v58 = vadd.f32 %v184_v52, %v183_v48 }
  0xa0   :  { %v155_v51 = vpop.xlane.xlu0 %154 }
  0xa1   :  { %v156_v53 = vrot.slane %v155_v51, 4  ;;  %v132_v54 = vrot.slane %v131_v49, 1  ;;  %v186_v63 = vrot.slane %v185_v58, 1 }
  0xa3   :  { %v157_v55 = vadd.f32 %v156_v53, %v155_v51  ;;  %v133_v56 = vadd.f32 %v132_v54, %v131_v49  ;;  %v187_v2 = vadd.f32 %v186_v63, %v185_v58 }
  0xa5   :  { %v158_v59 = vrot.slane %v157_v55, 2  ;;  %219 = vpush %v133_v56 }
  0xa7   :  { %v159_v60 = vadd.f32 %v158_v59, %v157_v55 }
  0xa9   :  { %v160_v62 = vrot.slane %v159_v60, 1 }
  0xab   :  { %v161_v0 = vadd.f32 %v160_v62, %v159_v60 }
  0xad   :  { %221 = vpush %v161_v0 }
  0xae   :  { %223 = vpush %v174_v1 }
  0xaf   :  { %225 = vpush %v187_v2 }
  0xd6   :  { %s220_s2 = spop %219 }
  0xd7   :  { %136 = sst [smem:[#allocation11]] %s220_s2 }
  0xde   :  { %s222_s12 = spop %221 }
  0xdf   :  { %164 = sst [smem:[#allocation11 + $0x1]] %s222_s12  ;;  %s224_s13 = spop %223 }
  0xe0   :  { %177 = sst [smem:[#allocation11 + $0x2]] %s224_s13  ;;  %s226_s14 = spop %225 }
  0xe1   :  { %190 = sst [smem:[#allocation11 + $0x3]] %s226_s14 }
  0xe2   :  { %209 = dma.smem_to_vmem %s382_s15, 16, %s207_s11, [#allocation4]  }
  0xe3   :  { %373 = dma.done.wait [#allocation4], 16  }
  0xe4   :  { %374 = vsyncadd [#allocation4], 4294967280 }
  0xe5   :  { %214 = sfence }
  0xe6   :  { %215 = vsyncpa [#allocation3], 1 }
  0xe7   :  { %216 = vsyncpa [#allocation6], 1 }
  0xe8   :  { %217 = vsyncpa [#allocation9], 1 }
  0xe9   :  { %218 = vsyncpa [#allocation4], 1 }

</bundles_post_ra>
